<compile_context>
chip_gen: v7x
topology: tpu7x:2x2x1
jax: 0.10.0
libtpu: 0.0.40
codegen_flags: <defaults>
</compile_context>

<pallas_src>
import jax
import jax.numpy as jnp
from jax.experimental import pallas as pl
from jax.experimental.pallas import tpu as pltpu


def _round_up(a, m):
    return (a + m - 1) // m * m


def _cdiv(a, b):
    return -(-a // b)


def mlp_kernel(x_ref, w1_ref, b1_ref, w23_ref, b23_ref, w4_ref, b4_ref, o_ref):
    # x tile: (TM, 12) f32 -> bf16 for the MXU.
    x = x_ref[...].astype(jnp.bfloat16)

    # Linear(12,512) with BN1 folded in; ReLU. (Dropout = identity in eval.)
    h1 = jnp.dot(x, w1_ref[...], preferred_element_type=jnp.float32) + b1_ref[...]
    h1 = jnp.maximum(h1, 0.0)

    # Fused Linear(512,512) o Linear(512,512) (+BN2 folded); ReLU.
    # (cat([e],1) is a no-op; the fusion is exact in eval mode.)
    h2 = jnp.dot(h1.astype(jnp.bfloat16), w23_ref[...],
                 preferred_element_type=jnp.float32) + b23_ref[...]
    h2 = jnp.maximum(h2, 0.0)

    # Linear(512,1) + Sigmoid, computed as (1,512) . (TM,512)^T on the MXU so
    # the result is already a lane-dense (1, TM) row (dense, unmasked store).
    logits = jax.lax.dot_general(
        w4_ref[...], h2.astype(jnp.bfloat16),
        dimension_numbers=(((1,), (1,)), ((), ())),
        preferred_element_type=jnp.float32,
    ) + b4_ref[0, 0]                                          # (1, TM)
    o_ref[...] = jax.nn.sigmoid(logits)[None]                 # (1, 1, TM)


def neural_network_forward(x, params):
    B = x.shape[0]
    x_flat = x.reshape(B, -1).astype(jnp.float32)             # x.view(B, -1)
    F = x_flat.shape[1]

    (w1, b1, g1, be1, m1, v1,
     w2, b2,
     w3, b3, g2, be2, m2, v2,
     w4, b4) = params
    eps = 1e-5

    # Fold BatchNorm1d (eval) into the preceding Linear:
    #   BN(x@W + b) = x@(W*s) + (b*s + t),  s = gamma/sqrt(var+eps), t = beta - mean*s
    s1 = g1 / jnp.sqrt(v1 + eps)
    t1 = be1 - m1 * s1
    s2 = g2 / jnp.sqrt(v2 + eps)
    t2 = be2 - m2 * s2

    w1f = (w1 * s1[None, :]).astype(jnp.bfloat16)             # (12, 512)
    b1f = (b1 * s1 + t1).reshape(1, -1).astype(jnp.float32)   # (1, 512)

    # Eval-only fusion of Linear2 and Linear3(+BN2), done once in f32:
    #   (h@W2 + b2) @ (W3*s2) + (b3*s2 + t2) = h @ W23 + b23
    w3f = w3 * s2[None, :]
    b3f = b3 * s2 + t2
    w23 = jnp.dot(w2, w3f).astype(jnp.bfloat16)               # (512, 512)
    b23 = (jnp.dot(b2, w3f) + b3f).reshape(1, -1).astype(jnp.float32)  # (1, 512)

    w4r = w4.reshape(1, -1).astype(jnp.bfloat16)              # (1, 512)
    b4r = b4.reshape(1, 1).astype(jnp.float32)                # (1, 1) -> SMEM scalar

    # Batch tiling: TM up to 2048 amortizes the per-step pipeline overhead;
    # near-even tiles keep padding waste tiny; batches >= 1024 use >= 2 tiles
    # so both v7x TensorCores get work.
    TM_MAX = 2048
    g = _cdiv(B, TM_MAX)
    if B >= 1024:
        g = max(g, 2)
    TM = min(TM_MAX, _round_up(_cdiv(B, g), 8))
    G = _cdiv(B, TM)
    B_pad = G * TM
    if B_pad != B:
        x_flat = jnp.pad(x_flat, ((0, B_pad - B), (0, 0)))

    const = lambda a: pl.BlockSpec(a.shape, lambda i: (0, 0))  # VMEM-resident weights

    out = pl.pallas_call(
        mlp_kernel,
        out_shape=jax.ShapeDtypeStruct((G, 1, TM), jnp.float32),
        grid=(G,),
        in_specs=[
            pl.BlockSpec((TM, F), lambda i: (i, 0)),           # x batch tile
            const(w1f), const(b1f),
            const(w23), const(b23),
            const(w4r),
            pl.BlockSpec(memory_space=pltpu.MemorySpace.SMEM),  # b4 scalar
        ],
        out_specs=pl.BlockSpec((1, 1, TM), lambda i: (i, 0, 0)),  # lane-dense row
        compiler_params=pltpu.CompilerParams(
            dimension_semantics=("parallel",),
            vmem_limit_bytes=48 * 1024 * 1024,
        ),
    )(x_flat, w1f, b1f, w23, b23, w4r, b4r)

    return out.reshape(B_pad, 1)[:B]


def reference_forward(x, params):
    """Pure-JAX f32 reference of the PyTorch eval-mode forward."""
    (w1, b1, g1, be1, m1, v1,
     w2, b2,
     w3, b3, g2, be2, m2, v2,
     w4, b4) = params
    eps = 1e-5
    xf = x.reshape(x.shape[0], -1).astype(jnp.float32)
    h = xf @ w1 + b1
    h = (h - m1) / jnp.sqrt(v1 + eps) * g1 + be1
    h = jnp.maximum(h, 0.0)
    e = h @ w2 + b2                                            # Dropout -> identity (eval)
    z = e @ w3 + b3                                            # cat([e],1) is a no-op
    z = (z - m2) / jnp.sqrt(v2 + eps) * g2 + be2
    z = jnp.maximum(z, 0.0)
    return jax.nn.sigmoid(z @ w4 + b4)


def init_params(key):
    """Deterministic parameter init matching the PyTorch module's shapes."""
    ks = jax.random.split(key, 8)

    def linear(kw, kb, fan_in, fan_out):
        bound = 1.0 / jnp.sqrt(fan_in)
        w = jax.random.uniform(kw, (fan_in, fan_out), jnp.float32, -bound, bound)
        b = jax.random.uniform(kb, (fan_out,), jnp.float32, -bound, bound)
        return w, b

    w1, b1 = linear(ks[0], ks[1], 12, 512)      # nn.Linear(12, 512)
    w2, b2 = linear(ks[2], ks[3], 512, 512)     # nn.Linear(512, 512)
    w3, b3 = linear(ks[4], ks[5], 512, 512)     # nn.Linear(512, 512)
    w4, b4 = linear(ks[6], ks[7], 512, 1)       # nn.Linear(512, 1)

    # BatchNorm1d(512) default parameters / running stats.
    g1 = jnp.ones((512,), jnp.float32); be1 = jnp.zeros((512,), jnp.float32)
    m1 = jnp.zeros((512,), jnp.float32); v1 = jnp.ones((512,), jnp.float32)
    g2 = jnp.ones((512,), jnp.float32); be2 = jnp.zeros((512,), jnp.float32)
    m2 = jnp.zeros((512,), jnp.float32); v2 = jnp.ones((512,), jnp.float32)

    return (w1, b1, g1, be1, m1, v1,
            w2, b2,
            w3, b3, g2, be2, m2, v2,
            w4, b4)


if __name__ == "__main__":
    key = jax.random.PRNGKey(0)
    k_param, k_x = jax.random.split(key)

    params = init_params(k_param)
    # Example input: batch=2, shape (2, 3, 2, 2) -> flattened to (2, 12).
    x = jax.random.normal(k_x, (2, 3, 2, 2), dtype=jnp.float32)

    out = neural_network_forward(x, params)
    out = jax.block_until_ready(out)

    ref = reference_forward(x, params)
    assert out.shape == (2, 1)
    assert bool(jnp.all((out >= 0.0) & (out <= 1.0)))
    assert bool(jnp.allclose(out, ref, atol=2e-2, rtol=0.0)), (out, ref)
    print("KERNEL_OK")
</pallas_src>

<mosaic_0001>
module attributes {stable_mosaic.version = 11 : i64} {
  func.func @mlp_kernel(%arg0: i32, %arg1: memref<8x12xf32, #tpu.memory_space<vmem>>, %arg2: memref<12x512xbf16, #tpu.memory_space<vmem>>, %arg3: memref<1x512xf32, #tpu.memory_space<vmem>>, %arg4: memref<512x512xbf16, #tpu.memory_space<vmem>>, %arg5: memref<1x512xf32, #tpu.memory_space<vmem>>, %arg6: memref<1x512xbf16, #tpu.memory_space<vmem>>, %arg7: memref<1x1xf32, #tpu.memory_space<smem>>, %arg8: memref<1x1x8xf32, #tpu.memory_space<vmem>>) attributes {dimension_semantics = [#tpu.dimension_semantics<parallel>], iteration_bounds = array<i64: 1>, scalar_prefetch = 0 : i64, scratch_operands = 0 : i64, tpu.core_type = #tpu.core_type<tc>, window_params = [{transform_indices = @transform_0, window_bounds = array<i64: 8, 12>}, {pipeline_mode = #tpu.pipeline_mode<synchronous>, transform_indices = @transform_1, window_bounds = array<i64: 12, 512>}, {pipeline_mode = #tpu.pipeline_mode<synchronous>, transform_indices = @transform_2, window_bounds = array<i64: 1, 512>}, {pipeline_mode = #tpu.pipeline_mode<synchronous>, transform_indices = @transform_3, window_bounds = array<i64: 512, 512>}, {pipeline_mode = #tpu.pipeline_mode<synchronous>, transform_indices = @transform_4, window_bounds = array<i64: 1, 512>}, {pipeline_mode = #tpu.pipeline_mode<synchronous>, transform_indices = @transform_5, window_bounds = array<i64: 1, 512>}, {transform_indices = @transform_6, window_bounds = array<i64: 1, 1>}, {transform_indices = @transform_7, window_bounds = array<i64: 1, 1, 8>}]} {
    %c0 = arith.constant 0 : index
    %c0_0 = arith.constant 0 : index
    %0 = vector.load %arg1[%c0, %c0_0] : memref<8x12xf32, #tpu.memory_space<vmem>>, vector<8x12xf32>
    %1 = arith.truncf %0 : vector<8x12xf32> to vector<8x12xbf16>
    %c0_1 = arith.constant 0 : index
    %c0_2 = arith.constant 0 : index
    %2 = vector.load %arg2[%c0_1, %c0_2] : memref<12x512xbf16, #tpu.memory_space<vmem>>, vector<12x512xbf16>
    %cst = arith.constant dense<0.000000e+00> : vector<8x512xf32>
    %3 = tpu.matmul %1, %2, %cst {dimension_numbers = #tpu.dot_dimension_numbers<[1], [0], [0], [1], [0, 0, 1, 1], [], []>} : vector<8x12xbf16>, vector<12x512xbf16>, vector<8x512xf32> -> vector<8x512xf32>
    %c0_3 = arith.constant 0 : index
    %c0_4 = arith.constant 0 : index
    %4 = vector.load %arg3[%c0_3, %c0_4] : memref<1x512xf32, #tpu.memory_space<vmem>>, vector<1x512xf32>
    %5 = vector.broadcast %4 : vector<1x512xf32> to vector<8x512xf32>
    %6 = arith.addf %3, %5 : vector<8x512xf32>
    %cst_5 = arith.constant 0.000000e+00 : f32
    %7 = vector.broadcast %cst_5 : f32 to vector<8x512xf32>
    %8 = arith.maximumf %6, %7 : vector<8x512xf32>
    %9 = arith.truncf %8 : vector<8x512xf32> to vector<8x512xbf16>
    %c0_6 = arith.constant 0 : index
    %c0_7 = arith.constant 0 : index
    %10 = vector.load %arg4[%c0_6, %c0_7] : memref<512x512xbf16, #tpu.memory_space<vmem>>, vector<512x512xbf16>
    %cst_8 = arith.constant dense<0.000000e+00> : vector<8x512xf32>
    %11 = tpu.matmul %9, %10, %cst_8 {dimension_numbers = #tpu.dot_dimension_numbers<[1], [0], [0], [1], [0, 0, 1, 1], [], []>} : vector<8x512xbf16>, vector<512x512xbf16>, vector<8x512xf32> -> vector<8x512xf32>
    %c0_9 = arith.constant 0 : index
    %c0_10 = arith.constant 0 : index
    %12 = vector.load %arg5[%c0_9, %c0_10] : memref<1x512xf32, #tpu.memory_space<vmem>>, vector<1x512xf32>
    %13 = vector.broadcast %12 : vector<1x512xf32> to vector<8x512xf32>
    %14 = arith.addf %11, %13 : vector<8x512xf32>
    %cst_11 = arith.constant 0.000000e+00 : f32
    %15 = vector.broadcast %cst_11 : f32 to vector<8x512xf32>
    %16 = arith.maximumf %14, %15 : vector<8x512xf32>
    %c0_12 = arith.constant 0 : index
    %c0_13 = arith.constant 0 : index
    %17 = vector.load %arg6[%c0_12, %c0_13] : memref<1x512xbf16, #tpu.memory_space<vmem>>, vector<1x512xbf16>
    %18 = arith.truncf %16 : vector<8x512xf32> to vector<8x512xbf16>
    %cst_14 = arith.constant dense<0.000000e+00> : vector<1x8xf32>
    %19 = tpu.matmul %17, %18, %cst_14 {dimension_numbers = #tpu.dot_dimension_numbers<[1], [1], [0], [0], [0, 0, 1, 0], [], []>} : vector<1x512xbf16>, vector<8x512xbf16>, vector<1x8xf32> -> vector<1x8xf32>
    %c0_15 = arith.constant 0 : index
    %c0_16 = arith.constant 0 : index
    %20 = memref.load %arg7[%c0_15, %c0_16] : memref<1x1xf32, #tpu.memory_space<smem>>
    %21 = vector.broadcast %20 : f32 to vector<1x8xf32>
    %22 = arith.addf %19, %21 : vector<1x8xf32>
    %23 = arith.negf %22 : vector<1x8xf32>
    %24 = math.exp %23 : vector<1x8xf32>
    %cst_17 = arith.constant 1.000000e+00 : f32
    %25 = vector.broadcast %cst_17 : f32 to vector<1x8xf32>
    %26 = arith.addf %25, %24 : vector<1x8xf32>
    %27 = arith.divf %25, %26 : vector<1x8xf32>
    %28 = vector.shape_cast %27 : vector<1x8xf32> to vector<1x1x8xf32>
    %c0_18 = arith.constant 0 : index
    %c0_19 = arith.constant 0 : index
    %c0_20 = arith.constant 0 : index
    %29 = vector.load %arg8[%c0_18, %c0_19, %c0_20] : memref<1x1x8xf32, #tpu.memory_space<vmem>>, vector<1x1x8xf32>
    tpu.vector_store %arg8[%c0_18, %c0_19, %c0_20], %28 {strides = array<i32>} : memref<1x1x8xf32, #tpu.memory_space<vmem>>, vector<1x1x8xf32>,
    return
  }
  func.func @transform_0(%arg0: i32) -> (i32, i32) {
    %c0_i32 = arith.constant 0 : i32
    %c0_i32_0 = arith.constant 0 : i32
    return %arg0, %c0_i32 : i32, i32
  }
  func.func @transform_1(%arg0: i32) -> (i32, i32) {
    %c0_i32 = arith.constant 0 : i32
    %c0_i32_0 = arith.constant 0 : i32
    %c0_i32_1 = arith.constant 0 : i32
    return %c0_i32, %c0_i32_0 : i32, i32
  }
  func.func @transform_2(%arg0: i32) -> (i32, i32) {
    %c0_i32 = arith.constant 0 : i32
    %c0_i32_0 = arith.constant 0 : i32
    %c0_i32_1 = arith.constant 0 : i32
    return %c0_i32, %c0_i32_0 : i32, i32
  }
  func.func @transform_3(%arg0: i32) -> (i32, i32) {
    %c0_i32 = arith.constant 0 : i32
    %c0_i32_0 = arith.constant 0 : i32
    %c0_i32_1 = arith.constant 0 : i32
    return %c0_i32, %c0_i32_0 : i32, i32
  }
  func.func @transform_4(%arg0: i32) -> (i32, i32) {
    %c0_i32 = arith.constant 0 : i32
    %c0_i32_0 = arith.constant 0 : i32
    %c0_i32_1 = arith.constant 0 : i32
    return %c0_i32, %c0_i32_0 : i32, i32
  }
  func.func @transform_5(%arg0: i32) -> (i32, i32) {
    %c0_i32 = arith.constant 0 : i32
    %c0_i32_0 = arith.constant 0 : i32
    %c0_i32_1 = arith.constant 0 : i32
    return %c0_i32, %c0_i32_0 : i32, i32
  }
  func.func @transform_6(%arg0: i32) -> (i32, i32) {
    %c0_i32 = arith.constant 0 : i32
    %c0_i32_0 = arith.constant 0 : i32
    %c0_i32_1 = arith.constant 0 : i32
    return %c0_i32, %c0_i32_0 : i32, i32
  }
  func.func @transform_7(%arg0: i32) -> (i32, i32, i32) {
    %c0_i32 = arith.constant 0 : i32
    %c0_i32_0 = arith.constant 0 : i32
    %c0_i32_1 = arith.constant 0 : i32
    return %arg0, %c0_i32, %c0_i32_0 : i32, i32, i32
  }
}

</mosaic_0001>

<bundles_post_ra>
// kernel: tpu_custom_call.1
= control target key start
LH: loop header
LB: loop body
LE: loop exit
PB: predicated region body
PF: predicated region fallthrough
CT: control target
= control target key end

     0   :  { %13 = vsyncpa [#allocation4], 0  ;;  %s1915_s0 = inlined_call_operand.hbm [shape: f32[8,12], index: 0, kind: input, shape index: {}]   ;;  %s1916_s1 = inlined_call_operand.hbm [shape: bf16[12,512], index: 1, kind: input, shape index: {}]   ;;  %s1917_s2 = inlined_call_operand.vmem [shape: f32[1,512], index: 2, kind: input, shape index: {}]   ;;  %s1918_s3 = inlined_call_operand.hbm [shape: bf16[512,512], index: 3, kind: input, shape index: {}]   ;;  %s1919_s4 = inlined_call_operand.vmem [shape: f32[1,512], index: 4, kind: input, shape index: {}]   ;;  %s1920_s5 = inlined_call_operand.vmem [shape: bf16[1,512], index: 5, kind: input, shape index: {}]   ;;  %s1921_s6 = inlined_call_operand.<no memory space> [shape: f32[1,1], index: 6, kind: input, shape index: {}]   ;;  %s1922_s7 = inlined_call_operand.hbm [shape: f32[1,1,8], index: 7, kind: output, shape index: {}]  }
   0x1   :  { %14 = vsyncpa [#allocation7], 0 }
   0x2   :  { %15 = vsyncpa [#allocation5], 0  ;;  %s1773_s24 = smov [#allocation6]   ;;  %s1679_s28 = scalar_lea.hbm %s1916_s1, 512 }
   0x3   :  { %s31_s25 = sshll.u32 %s1773_s24, 4  ;;  %p1680_p0 = scmp.ne.s32.totalorder %s1916_s1, %s1679_s28  ;;  %s32_s25 = int_to_ptr.vmem [resolvable:$true] %s31_s25 }
   0x4   :  { %p1683_p1 = scmp.lt.u32.totalorder %s1679_s28, %s1916_s1 }
   0x6   :  { %p1685_p2 = pnand %p1683_p1, %p1680_p0 }
   0x8   :  { %1688 = shalt.err (!%p1685_p2)
}
   0x9   :  { %s1689_s10 = scalar_lea.vmem %s32_s25, 512  ;;  %p1694_p4 = scmp.lt.s32.totalorder %s32_s25, %s32_s25 }
   0xa   :  { %p1690_p3 = scmp.ne.s32.totalorder %s32_s25, %s1689_s10  ;;  %p1695_p5 = scmp.lt.s32.totalorder %s1689_s10, %s1689_s10 }
   0xc   :  { %p1696_p6 = por %p1695_p5, %p1694_p4 }
   0xe   :  { %p1697_p7 = pnand %p1696_p6, %p1690_p3 }
  0x10   :  { %1700 = shalt.err (!%p1697_p7)
}
  0x11   :  { %s1774_s11 = smov 256   ;;  %s1775_s12 = smov 16  }
  0x12   :  { %37 = dma.hbm_to_vmem [thread:$0]  %s1916_s1, 512, %s32_s25, [#allocation7], %s1774_s11, %s1774_s11, %s1775_s12  }
  0x13   :  { %s1776_s15 = smov [#allocation3]   ;;  %s1777_s17 = smov [#allocation8]  }
  0x14   :  { %s22_s16 = sshll.u32 %s1776_s15, 4  ;;  %s45_s18 = sshll.u32 %s1777_s17, 4  ;;  %s23_s16 = int_to_ptr.vmem [resolvable:$true] %s22_s16  ;;  %s46_s18 = int_to_ptr.vmem [resolvable:$true] %s45_s18 }
  0x15   :  { %s1701_s21 = scalar_lea.hbm %s1915_s0, 128 }
  0x16   :  { %p1702_p8 = scmp.ne.s32.totalorder %s1915_s0, %s1701_s21  ;;  %p1705_p9 = scmp.lt.u32.totalorder %s1701_s21, %s1915_s0 }
  0x18   :  { %p1707_p10 = pnand %p1705_p9, %p1702_p8 }
  0x1a   :  { %1710 = shalt.err (!%p1707_p10)
}
  0x1b   :  { %s1711_s1 = scalar_lea.vmem %s23_s16, 128  ;;  %p1716_p12 = scmp.lt.s32.totalorder %s23_s16, %s23_s16 }
  0x1c   :  { %p1712_p11 = scmp.ne.s32.totalorder %s23_s16, %s1711_s1  ;;  %p1717_p13 = scmp.lt.s32.totalorder %s1711_s1, %s1711_s1 }
  0x1e   :  { %p1718_p0 = por %p1717_p13, %p1716_p12 }
  0x20   :  { %p1719_p1 = pnand %p1718_p0, %p1712_p11 }
  0x22   :  { %1722 = shalt.err (!%p1719_p1)
}
  0x23   :  { %25 = dma.hbm_to_vmem [thread:$0]  %s1915_s0, 128, %s23_s16, [#allocation4]  }
  0x24   :  { %s1723_s30 = scalar_lea.hbm %s1918_s3, 16384 }
  0x25   :  { %p1724_p2 = scmp.ne.s32.totalorder %s1918_s3, %s1723_s30  ;;  %p1727_p3 = scmp.lt.u32.totalorder %s1723_s30, %s1918_s3 }
  0x27   :  { %p1729_p4 = pnand %p1727_p3, %p1724_p2 }
  0x29   :  { %1732 = shalt.err (!%p1729_p4)
}
  0x2a   :  { %s1733_s14 = scalar_lea.vmem %s46_s18, 16384  ;;  %p1738_p6 = scmp.lt.s32.totalorder %s46_s18, %s46_s18 }
  0x2b   :  { %p1734_p5 = scmp.ne.s32.totalorder %s46_s18, %s1733_s14  ;;  %p1739_p7 = scmp.lt.s32.totalorder %s1733_s14, %s1733_s14 }
  0x2d   :  { %p1740_p8 = por %p1739_p7, %p1738_p6 }
  0x2f   :  { %p1741_p9 = pnand %p1740_p8, %p1734_p5 }
  0x31   :  { %1744 = shalt.err (!%p1741_p9)
}
  0x32   :  { %51 = dma.hbm_to_vmem [thread:$0]  %s1918_s3, 16384, %s46_s18, [#allocation7], %s1774_s11, %s1774_s11, %s1775_s12  }
  0x33   :  { %1767 = dma.done.wait [#allocation4], 128  }
  0x34   :  { %1768 = vsyncadd [#allocation4], 4294967168 }
  0x35   :  { %1769 = dma.done.wait [#allocation7], 16896  }
  0x36   :  { %1770 = vsyncadd [#allocation7], 4294950400  ;;  %v1778_v0 = vmov 0   ;;  %vm116_vm0 = vcmask 1045504   ;;  %v68_v3 = vld [vmem:[#allocation3] sm:$0xff]  ;;  %vm112_vm1 = vcmask 97280  }
  0x37   :  { %161 = vmatprep.mubr.bf16.mxu0 %v1778_v0  ;;  %202 = vmatprep.mubr.bf16.mxu1 %v1778_v0  ;;  %v1477_v1 = vld [vmem:[#allocation6 + $0x4] ss:$16 sps:$4 sm:$0x3f]   ;;  %v1479_v2 = vld [vmem:[#allocation6] ss:$16 sps:$4 sm:$0x3f]   ;;  %v69_v6 = vpack.c.bf16 %v68_v3, %v68_v3 }
  0x38   :  { %1321 = vmatprep.subr.msk.bf16.mxu0 %vm116_vm0, %v1477_v1  ;;  %v1480_v4 = vld [vmem:[#allocation6 + $0xc] ss:$16 sps:$4 sm:$0x3f]   ;;  %v118_v5 = vsel %vm116_vm0, %v1479_v2, 0  ;;  %v1483_v8 = vld [vmem:[#allocation8] ss:$16 sps:$4 sm:$0xff]  }
  0x39   :  { %v1482_v7 = vld [vmem:[#allocation6 + $0x8] ss:$16 sps:$4 sm:$0x3f]   ;;  %130 = vmatpush1.bf16.msra.mxu0 %v118_v5  ;;  %1323 = vmatprep.subr.msk.bf16.mxu1 %vm116_vm0, %v1480_v4  ;;  %v1485_v9 = vld [vmem:[#allocation8 + $0x4] ss:$16 sps:$4 sm:$0xff]   ;;  %s1780_s18 = smov [#allocation9]  }
  0x3a   :  { %v124_v10 = vsel %vm116_vm0, %v1482_v7, 0  ;;  %v1488_v11 = vld [vmem:[#allocation8 + $0xc] ss:$16 sps:$4 sm:$0xff]   ;;  %1009 = vmatprep.subr.bf16.mxu0 %v1485_v9  ;;  %v1486_v12 = vld [vmem:[#allocation8 + $0x8] ss:$16 sps:$4 sm:$0xff]   ;;  %s1307_s19 = sshll.u32 %s1780_s18, 4  ;;  %s1308_s19 = int_to_ptr.vmem [resolvable:$true] %s1307_s19 }
  0x3b   :  { %171 = vmatpush1.bf16.msra.mxu1 %v124_v10  ;;  %v1491_v13 = vld [vmem:[#allocation8 + $0x24] ss:$16 sps:$4 sm:$0xff]   ;;  %v1489_v14 = vld [vmem:[#allocation8 + $0x20] ss:$16 sps:$4 sm:$0xff]   ;;  %v1494_v15 = vld [vmem:[#allocation8 + $0x2c] ss:$16 sps:$4 sm:$0xff]   ;;  %p1750_p11 = scmp.lt.s32.totalorder %s1308_s19, %s1308_s19 }
  0x3c   :  { %1322 = vmatmul.mubr.msk.bf16.vlgmr.msra.gmra.mrb[0].mxu0 %vm112_vm1, %v69_v6  ;;  %1091 = vmatprep.subr.bf16.mxu1 %v1488_v11  ;;  %v1497_v16 = vld [vmem:[#allocation8 + $0x44] ss:$16 sps:$4 sm:$0xff]   ;;  %v1492_v17 = vld [vmem:[#allocation8 + $0x28] ss:$16 sps:$4 sm:$0xff]   ;;  %v1500_v18 = vld [vmem:[#allocation8 + $0x4c] ss:$16 sps:$4 sm:$0xff]   ;;  %v76_v11 = vlaneseq }
  0x3d   :  { %1010 = vmatpush1.bf16.msra.mxu0 %v1483_v8  ;;  %v1495_v19 = vld [vmem:[#allocation8 + $0x40] ss:$16 sps:$4 sm:$0xff]   ;;  %v1503_v20 = vld [vmem:[#allocation8 + $0x64] ss:$16 sps:$4 sm:$0xff]   ;;  %v1498_v21 = vld [vmem:[#allocation8 + $0x48] ss:$16 sps:$4 sm:$0xff]  }
  0x3e   :  { %1324 = vmatmul.mubr.msk.bf16.vlgmr.msra.gmra.mrb[0].mxu1 %vm112_vm1, %v69_v6  ;;  %1011 = vmatprep.subr.bf16.mxu0 %v1491_v13  ;;  %v1506_v22 = vld [vmem:[#allocation8 + $0x6c] ss:$16 sps:$4 sm:$0xff]   ;;  %v1501_v23 = vld [vmem:[#allocation8 + $0x60] ss:$16 sps:$4 sm:$0xff]   ;;  %v1509_v24 = vld [vmem:[#allocation8 + $0x84] ss:$16 sps:$4 sm:$0xff]  }
  0x3f   :  { %1092 = vmatpush1.bf16.msra.mxu1 %v1486_v12  ;;  %v1504_v25 = vld [vmem:[#allocation8 + $0x68] ss:$16 sps:$4 sm:$0xff]   ;;  %v1512_v26 = vld [vmem:[#allocation8 + $0x8c] ss:$16 sps:$4 sm:$0xff]   ;;  %v1507_v27 = vld [vmem:[#allocation8 + $0x80] ss:$16 sps:$4 sm:$0xff]  }
  0x40   :  { %1093 = vmatprep.subr.bf16.mxu1 %v1494_v15  ;;  %v1515_v28 = vld [vmem:[#allocation8 + $0xa4] ss:$16 sps:$4 sm:$0xff]   ;;  %v1510_v29 = vld [vmem:[#allocation8 + $0x88] ss:$16 sps:$4 sm:$0xff]   ;;  %v1518_v30 = vld [vmem:[#allocation8 + $0xac] ss:$16 sps:$4 sm:$0xff]  }
  0x41   :  { %1012 = vmatpush1.bf16.msra.mxu0 %v1489_v14  ;;  %v1513_v31 = vld [vmem:[#allocation8 + $0xa0] ss:$16 sps:$4 sm:$0xff]   ;;  %v1521_v32 = vld [vmem:[#allocation8 + $0xc4] ss:$16 sps:$4 sm:$0xff]   ;;  %v1516_v33 = vld [vmem:[#allocation8 + $0xa8] ss:$16 sps:$4 sm:$0xff]  }
  0x42   :  { %1013 = vmatprep.subr.bf16.mxu0 %v1497_v16  ;;  %v1524_v34 = vld [vmem:[#allocation8 + $0xcc] ss:$16 sps:$4 sm:$0xff]   ;;  %v1519_v35 = vld [vmem:[#allocation8 + $0xc0] ss:$16 sps:$4 sm:$0xff]   ;;  %v1527_v36 = vld [vmem:[#allocation8 + $0xe4] ss:$16 sps:$4 sm:$0xff]  }
  0x43   :  { %1094 = vmatpush1.bf16.msra.mxu1 %v1492_v17  ;;  %v1522_v37 = vld [vmem:[#allocation8 + $0xc8] ss:$16 sps:$4 sm:$0xff]   ;;  %v1530_v38 = vld [vmem:[#allocation8 + $0xec] ss:$16 sps:$4 sm:$0xff]   ;;  %v1525_v39 = vld [vmem:[#allocation8 + $0xe0] ss:$16 sps:$4 sm:$0xff]  }
  0x44   :  { %1095 = vmatprep.subr.bf16.mxu1 %v1500_v18  ;;  %v1533_v40 = vld [vmem:[#allocation8 + $0x104] ss:$16 sps:$4 sm:$0xff]   ;;  %v1528_v41 = vld [vmem:[#allocation8 + $0xe8] ss:$16 sps:$4 sm:$0xff]   ;;  %v1536_v42 = vld [vmem:[#allocation8 + $0x10c] ss:$16 sps:$4 sm:$0xff]  }
  0x45   :  { %1014 = vmatpush1.bf16.msra.mxu0 %v1495_v19  ;;  %v1531_v43 = vld [vmem:[#allocation8 + $0x100] ss:$16 sps:$4 sm:$0xff]   ;;  %v1539_v44 = vld [vmem:[#allocation8 + $0x124] ss:$16 sps:$4 sm:$0xff]   ;;  %v1534_v45 = vld [vmem:[#allocation8 + $0x108] ss:$16 sps:$4 sm:$0xff]  }
  0x46   :  { %1015 = vmatprep.subr.bf16.mxu0 %v1503_v20  ;;  %v1537_v46 = vld [vmem:[#allocation8 + $0x120] ss:$16 sps:$4 sm:$0xff]   ;;  %v1542_v47 = vld [vmem:[#allocation8 + $0x12c] ss:$16 sps:$4 sm:$0xff]   ;;  %v1540_v48 = vld [vmem:[#allocation8 + $0x128] ss:$16 sps:$4 sm:$0xff]  }
  0x47   :  { %1096 = vmatpush1.bf16.msra.mxu1 %v1498_v21  ;;  %v1545_v49 = vld [vmem:[#allocation8 + $0x144] ss:$16 sps:$4 sm:$0xff]   ;;  %v1548_v50 = vld [vmem:[#allocation8 + $0x14c] ss:$16 sps:$4 sm:$0xff]   ;;  %v1543_v51 = vld [vmem:[#allocation8 + $0x140] ss:$16 sps:$4 sm:$0xff]  }
  0x48   :  { %1097 = vmatprep.subr.bf16.mxu1 %v1506_v22  ;;  %v1551_v52 = vld [vmem:[#allocation8 + $0x164] ss:$16 sps:$4 sm:$0xff]   ;;  %v1546_v53 = vld [vmem:[#allocation8 + $0x148] ss:$16 sps:$4 sm:$0xff]   ;;  %v1554_v54 = vld [vmem:[#allocation8 + $0x16c] ss:$16 sps:$4 sm:$0xff]  }
  0x49   :  { %1016 = vmatpush1.bf16.msra.mxu0 %v1501_v23  ;;  %v1549_v55 = vld [vmem:[#allocation8 + $0x160] ss:$16 sps:$4 sm:$0xff]   ;;  %v1557_v56 = vld [vmem:[#allocation8 + $0x184] ss:$16 sps:$4 sm:$0xff]   ;;  %v1552_v57 = vld [vmem:[#allocation8 + $0x168] ss:$16 sps:$4 sm:$0xff]  }
  0x4a   :  { %1017 = vmatprep.subr.bf16.mxu0 %v1509_v24  ;;  %v1560_v58 = vld [vmem:[#allocation8 + $0x18c] ss:$16 sps:$4 sm:$0xff]   ;;  %v1555_v59 = vld [vmem:[#allocation8 + $0x180] ss:$16 sps:$4 sm:$0xff]   ;;  %v1563_v60 = vld [vmem:[#allocation8 + $0x1a4] ss:$16 sps:$4 sm:$0xff]  }
  0x4b   :  { %1098 = vmatpush1.bf16.msra.mxu1 %v1504_v25  ;;  %v1558_v61 = vld [vmem:[#allocation8 + $0x188] ss:$16 sps:$4 sm:$0xff]   ;;  %v1566_v62 = vld [vmem:[#allocation8 + $0x1ac] ss:$16 sps:$4 sm:$0xff]   ;;  %v1561_v63 = vld [vmem:[#allocation8 + $0x1a0] ss:$16 sps:$4 sm:$0xff]  }
  0x4c   :  { %1099 = vmatprep.subr.bf16.mxu1 %v1512_v26  ;;  %v1564_v0 = vld [vmem:[#allocation8 + $0x1a8] ss:$16 sps:$4 sm:$0xff]   ;;  %v1569_v1 = vld [vmem:[#allocation8 + $0x1c4] ss:$16 sps:$4 sm:$0xff]   ;;  %v1572_v2 = vld [vmem:[#allocation8 + $0x1cc] ss:$16 sps:$4 sm:$0xff]  }
  0x4d   :  { %1018 = vmatpush1.bf16.msra.mxu0 %v1507_v27  ;;  %v1567_v3 = vld [vmem:[#allocation8 + $0x1c0] ss:$16 sps:$4 sm:$0xff]   ;;  %v1570_v4 = vld [vmem:[#allocation8 + $0x1c8] ss:$16 sps:$4 sm:$0xff]   ;;  %v1575_v5 = vld [vmem:[#allocation8 + $0x1e4] ss:$16 sps:$4 sm:$0xff]  }
  0x4e   :  { %1019 = vmatprep.subr.bf16.mxu0 %v1515_v28  ;;  %v1578_v6 = vld [vmem:[#allocation8 + $0x1ec] ss:$16 sps:$4 sm:$0xff]   ;;  %v1573_v7 = vld [vmem:[#allocation8 + $0x1e0] ss:$16 sps:$4 sm:$0xff]   ;;  %v1576_v8 = vld [vmem:[#allocation8 + $0x1e8] ss:$16 sps:$4 sm:$0xff]  }
  0x4f   :  { %1100 = vmatpush1.bf16.msra.mxu1 %v1510_v29  ;;  %v1581_v9 = vld [vmem:[#allocation8 + $0x204] ss:$16 sps:$4 sm:$0xff]   ;;  %v1584_v10 = vld [vmem:[#allocation8 + $0x20c] ss:$16 sps:$4 sm:$0xff]   ;;  %v1863_v12 = vshrl.u32 %v76_v11, 7  ;;  %vm1299_vm2 = vcmask 57344  }
  0x50   :  { %1101 = vmatprep.subr.bf16.mxu1 %v1518_v30  ;;  %v1869_v14 = vld [vmem:[%s1917_s2] sm:$0xf]  ;;  %v1641_v11 = vld [vmem:[#allocation8 + $0x344] ss:$16 sps:$4 sm:$0xff]   ;;  %s1749_s20 = scalar_lea.vmem %s1308_s19, 32 }
  0x51   :  { %1020 = vmatpush1.bf16.msra.mxu0 %v1513_v31  ;;  %v78_v13 = vsub.s32 0, %v1863_v12  ;;  %v82_v15 = vsub.s32 1, %v1863_v12  ;;  %v90_v16 = vsub.s32 3, %v1863_v12 }
  0x52   :  { %1021 = vmatprep.subr.bf16.mxu0 %v1521_v32 }
  0x53   :  { %1102 = vmatpush1.bf16.msra.mxu1 %v1516_v33  ;;  %v79_v17 = vrot.slane %v1869_v14, %v78_v13  ;;  %v83_v18 = vrot.slane %v1869_v14, %v82_v15  ;;  %v91_v20 = vrot.slane %v1869_v14, %v90_v16 }
  0x54   :  { %1103 = vmatprep.subr.bf16.mxu1 %v1524_v34  ;;  %v1579_v34 = vld [vmem:[#allocation8 + $0x200] ss:$16 sps:$4 sm:$0xff]  }
  0x55   :  { %1022 = vmatpush1.bf16.msra.mxu0 %v1519_v35  ;;  %v1582_v35 = vld [vmem:[#allocation8 + $0x208] ss:$16 sps:$4 sm:$0xff]  }
  0x56   :  { %1023 = vmatprep.subr.bf16.mxu0 %v1527_v36 }
  0x57   :  { %1104 = vmatpush1.bf16.msra.mxu1 %v1522_v37 }
  0x58   :  { %1105 = vmatprep.subr.bf16.mxu1 %v1530_v38  ;;  %v1587_v38 = vld [vmem:[#allocation8 + $0x224] ss:$16 sps:$4 sm:$0xff]  }
  0x59   :  { %1024 = vmatpush1.bf16.msra.mxu0 %v1525_v39  ;;  %v1590_v39 = vld [vmem:[#allocation8 + $0x22c] ss:$16 sps:$4 sm:$0xff]  }
  0x5a   :  { %1025 = vmatprep.subr.bf16.mxu0 %v1533_v40 }
  0x5b   :  { %1106 = vmatpush1.bf16.msra.mxu1 %v1528_v41  ;;  %v1585_v41 = vld [vmem:[#allocation8 + $0x220] ss:$16 sps:$4 sm:$0xff]  }
  0x5c   :  { %1107 = vmatprep.subr.bf16.mxu1 %v1536_v42  ;;  %v1588_v42 = vld [vmem:[#allocation8 + $0x228] ss:$16 sps:$4 sm:$0xff]  }
  0x5d   :  { %1026 = vmatpush1.bf16.msra.mxu0 %v1531_v43  ;;  %v1593_v43 = vld [vmem:[#allocation8 + $0x244] ss:$16 sps:$4 sm:$0xff]  }
  0x5e   :  { %1027 = vmatprep.subr.bf16.mxu0 %v1539_v44  ;;  %v1596_v44 = vld [vmem:[#allocation8 + $0x24c] ss:$16 sps:$4 sm:$0xff]  }
  0x5f   :  { %1108 = vmatpush1.bf16.msra.mxu1 %v1534_v45  ;;  %v1591_v45 = vld [vmem:[#allocation8 + $0x240] ss:$16 sps:$4 sm:$0xff]  }
  0x60   :  { %1109 = vmatprep.subr.bf16.mxu1 %v1542_v47  ;;  %v1599_v47 = vld [vmem:[#allocation8 + $0x264] ss:$16 sps:$4 sm:$0xff]  }
  0x61   :  { %1028 = vmatpush1.bf16.msra.mxu0 %v1537_v46  ;;  %v1594_v46 = vld [vmem:[#allocation8 + $0x248] ss:$16 sps:$4 sm:$0xff]  }
  0x62   :  { %1029 = vmatprep.subr.bf16.mxu0 %v1545_v49  ;;  %v1597_v49 = vld [vmem:[#allocation8 + $0x260] ss:$16 sps:$4 sm:$0xff]  }
  0x63   :  { %1110 = vmatpush1.bf16.msra.mxu1 %v1540_v48  ;;  %v1602_v48 = vld [vmem:[#allocation8 + $0x26c] ss:$16 sps:$4 sm:$0xff]  }
  0x64   :  { %1111 = vmatprep.subr.bf16.mxu1 %v1548_v50  ;;  %v1600_v50 = vld [vmem:[#allocation8 + $0x268] ss:$16 sps:$4 sm:$0xff]  }
  0x65   :  { %1030 = vmatpush1.bf16.msra.mxu0 %v1543_v51  ;;  %v1605_v51 = vld [vmem:[#allocation8 + $0x284] ss:$16 sps:$4 sm:$0xff]  }
  0x66   :  { %1031 = vmatprep.subr.bf16.mxu0 %v1551_v52  ;;  %v1608_v52 = vld [vmem:[#allocation8 + $0x28c] ss:$16 sps:$4 sm:$0xff]  }
  0x67   :  { %1112 = vmatpush1.bf16.msra.mxu1 %v1546_v53  ;;  %v1603_v53 = vld [vmem:[#allocation8 + $0x280] ss:$16 sps:$4 sm:$0xff]  }
  0x68   :  { %1113 = vmatprep.subr.bf16.mxu1 %v1554_v54  ;;  %v1606_v54 = vld [vmem:[#allocation8 + $0x288] ss:$16 sps:$4 sm:$0xff]  }
  0x69   :  { %1032 = vmatpush1.bf16.msra.mxu0 %v1549_v55  ;;  %v1611_v55 = vld [vmem:[#allocation8 + $0x2a4] ss:$16 sps:$4 sm:$0xff]  }
  0x6a   :  { %1033 = vmatprep.subr.bf16.mxu0 %v1557_v56  ;;  %v1614_v56 = vld [vmem:[#allocation8 + $0x2ac] ss:$16 sps:$4 sm:$0xff]  }
  0x6b   :  { %1114 = vmatpush1.bf16.msra.mxu1 %v1552_v57  ;;  %v1609_v57 = vld [vmem:[#allocation8 + $0x2a0] ss:$16 sps:$4 sm:$0xff]  }
  0x6c   :  { %1115 = vmatprep.subr.bf16.mxu1 %v1560_v58  ;;  %v1612_v58 = vld [vmem:[#allocation8 + $0x2a8] ss:$16 sps:$4 sm:$0xff]  }
  0x6d   :  { %1034 = vmatpush1.bf16.msra.mxu0 %v1555_v59  ;;  %v1617_v59 = vld [vmem:[#allocation8 + $0x2c4] ss:$16 sps:$4 sm:$0xff]  }
  0x6e   :  { %1035 = vmatprep.subr.bf16.mxu0 %v1563_v60  ;;  %v1620_v60 = vld [vmem:[#allocation8 + $0x2cc] ss:$16 sps:$4 sm:$0xff]  }
  0x6f   :  { %1116 = vmatpush1.bf16.msra.mxu1 %v1558_v61  ;;  %v1615_v61 = vld [vmem:[#allocation8 + $0x2c0] ss:$16 sps:$4 sm:$0xff]  }
  0x70   :  { %1117 = vmatprep.subr.bf16.mxu1 %v1566_v62  ;;  %v1618_v62 = vld [vmem:[#allocation8 + $0x2c8] ss:$16 sps:$4 sm:$0xff]  }
  0x71   :  { %1036 = vmatpush1.bf16.msra.mxu0 %v1561_v63  ;;  %v1623_v63 = vld [vmem:[#allocation8 + $0x2e4] ss:$16 sps:$4 sm:$0xff]  }
  0x72   :  { %1037 = vmatprep.subr.bf16.mxu0 %v1569_v1  ;;  %v1621_v1 = vld [vmem:[#allocation8 + $0x2e0] ss:$16 sps:$4 sm:$0xff]  }
  0x73   :  { %1118 = vmatpush1.bf16.msra.mxu1 %v1564_v0  ;;  %v1626_v0 = vld [vmem:[#allocation8 + $0x2ec] ss:$16 sps:$4 sm:$0xff]  }
  0x74   :  { %1119 = vmatprep.subr.bf16.mxu1 %v1572_v2  ;;  %v1624_v2 = vld [vmem:[#allocation8 + $0x2e8] ss:$16 sps:$4 sm:$0xff]  }
  0x75   :  { %1038 = vmatpush1.bf16.msra.mxu0 %v1567_v3  ;;  %v1629_v3 = vld [vmem:[#allocation8 + $0x304] ss:$16 sps:$4 sm:$0xff]  }
  0x76   :  { %1039 = vmatprep.subr.bf16.mxu0 %v1575_v5  ;;  %v1627_v5 = vld [vmem:[#allocation8 + $0x300] ss:$16 sps:$4 sm:$0xff]  }
  0x77   :  { %1120 = vmatpush1.bf16.msra.mxu1 %v1570_v4  ;;  %v1632_v4 = vld [vmem:[#allocation8 + $0x30c] ss:$16 sps:$4 sm:$0xff]  }
  0x78   :  { %1121 = vmatprep.subr.bf16.mxu1 %v1578_v6  ;;  %v1630_v6 = vld [vmem:[#allocation8 + $0x308] ss:$16 sps:$4 sm:$0xff]  }
  0x79   :  { %1040 = vmatpush1.bf16.msra.mxu0 %v1573_v7  ;;  %v1635_v7 = vld [vmem:[#allocation8 + $0x324] ss:$16 sps:$4 sm:$0xff]  }
  0x7a   :  { %1050 = vmatprep.subr.bf16.mxu0 %v1581_v9  ;;  %v1633_v9 = vld [vmem:[#allocation8 + $0x320] ss:$16 sps:$4 sm:$0xff]  }
  0x7b   :  { %1122 = vmatpush1.bf16.msra.mxu1 %v1576_v8  ;;  %v1638_v8 = vld [vmem:[#allocation8 + $0x32c] ss:$16 sps:$4 sm:$0xff]  }
  0x7c   :  { %1132 = vmatprep.subr.bf16.mxu1 %v1584_v10  ;;  %v1636_v10 = vld [vmem:[#allocation8 + $0x328] ss:$16 sps:$4 sm:$0xff]  }
 0x10f   :  { %v163_v19 = vpop.f32.mrb[0].mxu0 }
 0x110   :  { %v164_v21 = vadd.f32 %v163_v19, %v79_v17  ;;  %v165_v22 = vpop.f32.mrb[1].mxu0  ;;  %v1644_v17 = vld [vmem:[#allocation8 + $0x34c] ss:$16 sps:$4 sm:$0xff]   ;;  %v1642_v19 = vld [vmem:[#allocation8 + $0x348] ss:$16 sps:$4 sm:$0xff]  }
 0x111   :  { %v166_v23 = vadd.f32 %v165_v22, %v83_v18  ;;  %v167_v24 = vpop.f32.mrb[2].mxu0  ;;  %v1882_v25 = vpop.f32.mrb[0].mxu1  ;;  %v1639_v18 = vld [vmem:[#allocation8 + $0x340] ss:$16 sps:$4 sm:$0xff]  }
 0x112   :  { %v211_v26 = vmax.f32 %v164_v21, 0.0  ;;  %v168_v27 = vpop.f32.mrb[3].mxu0  ;;  %v206_v28 = vpop.f32.mrb[1].mxu1  ;;  %v1650_v21 = vld [vmem:[#allocation8 + $0x36c] ss:$16 sps:$4 sm:$0xff]  }
 0x113   :  { %v212_v29 = vmax.f32 %v166_v23, 0.0  ;;  %v207_v30 = vadd.f32 %v206_v28, %v91_v20  ;;  %v208_v31 = vpop.f32.mrb[2].mxu1  ;;  %v1647_v20 = vld [vmem:[#allocation8 + $0x364] ss:$16 sps:$4 sm:$0xff]   ;;  %v1645_v22 = vld [vmem:[#allocation8 + $0x360] ss:$16 sps:$4 sm:$0xff]  }
 0x114   :  { %v209_v32 = vpop.f32.mrb[3].mxu1  ;;  %v215_v37 = vpack.c.bf16 %v211_v26, %v211_v26  ;;  %v1648_v23 = vld [vmem:[#allocation8 + $0x368] ss:$16 sps:$4 sm:$0xff]   ;;  %v1653_v24 = vld [vmem:[#allocation8 + $0x384] ss:$16 sps:$4 sm:$0xff]  }
 0x115   :  { %v216_v33 = vpack.c.bf16 %v212_v29, %v212_v29  ;;  %v214_v36 = vmax.f32 %v207_v30, 0.0  ;;  %v1656_v26 = vld [vmem:[#allocation8 + $0x38c] ss:$16 sps:$4 sm:$0xff]   ;;  %v1651_v27 = vld [vmem:[#allocation8 + $0x380] ss:$16 sps:$4 sm:$0xff]   ;;  %v86_v29 = vsub.s32 2, %v1863_v12 }
 0x116   :  { %v1654_v28 = vld [vmem:[#allocation8 + $0x388] ss:$16 sps:$4 sm:$0xff]   ;;  %v1659_v30 = vld [vmem:[#allocation8 + $0x3a4] ss:$16 sps:$4 sm:$0xff]   ;;  %v1662_v31 = vld [vmem:[#allocation8 + $0x3ac] ss:$16 sps:$4 sm:$0xff]  }
 0x117   :  { %1041 = vmatprep.mubr.bf16.mxu0 %v216_v33  ;;  %1123 = vmatprep.mubr.bf16.mxu1 %v216_v33  ;;  %v218_v40 = vpack.c.bf16 %v214_v36, %v214_v36  ;;  %v1657_v32 = vld [vmem:[#allocation8 + $0x3a0] ss:$16 sps:$4 sm:$0xff]   ;;  %v1660_v33 = vld [vmem:[#allocation8 + $0x3a8] ss:$16 sps:$4 sm:$0xff]   ;;  %v1668_v36 = vld [vmem:[#allocation8 + $0x3cc] ss:$16 sps:$4 sm:$0xff]  }
 0x118   :  { %1042 = vmatmul.mubr.bf16.vlgmr.msra.gmra.mrb[4].mxu0 %v215_v37  ;;  %1124 = vmatmul.mubr.bf16.vlgmr.msra.gmra.mrb[4].mxu1 %v215_v37  ;;  %v1663_v37 = vld [vmem:[#allocation8 + $0x3c0] ss:$16 sps:$4 sm:$0xff]  }
 0x119   :  { %1051 = vmatpush1.bf16.msra.mxu0 %v1579_v34  ;;  %1133 = vmatpush1.bf16.msra.mxu1 %v1582_v35  ;;  %v87_v34 = vrot.slane %v1869_v14, %v86_v29  ;;  %v1665_v35 = vld [vmem:[#allocation8 + $0x3c4] ss:$16 sps:$4 sm:$0xff]  }
 0x11a   :  { %1052 = vmatprep.subr.bf16.mxu0 %v1587_v38  ;;  %1134 = vmatprep.subr.bf16.mxu1 %v1590_v39  ;;  %v1666_v38 = vld [vmem:[#allocation8 + $0x3c8] ss:$16 sps:$4 sm:$0xff]  }
 0x11b   :  { %1082 = vmatprep.mubr.bf16.mxu0 %v218_v40  ;;  %1164 = vmatprep.mubr.bf16.mxu1 %v218_v40  ;;  %v205_v39 = vadd.f32 %v1882_v25, %v87_v34  ;;  %v1671_v40 = vld [vmem:[#allocation8 + $0x3e4] ss:$16 sps:$4 sm:$0xff]   ;;  %v1453_v25 = vld.sshfl [vmem:[%s1920_s5] sm:$0x33 pattern:$0x75316420] }
 0x11d   :  { %1053 = vmatpush1.bf16.msra.mxu0 %v1585_v41  ;;  %1135 = vmatpush1.bf16.msra.mxu1 %v1588_v42  ;;  %v1674_v41 = vld [vmem:[#allocation8 + $0x3ec] ss:$16 sps:$4 sm:$0xff]   ;;  %v1669_v42 = vld [vmem:[#allocation8 + $0x3e0] ss:$16 sps:$4 sm:$0xff]  }
 0x11e   :  { %1054 = vmatprep.subr.bf16.mxu0 %v1593_v43  ;;  %1136 = vmatprep.subr.bf16.mxu1 %v1596_v44  ;;  %v1672_v43 = vld [vmem:[#allocation8 + $0x3e8] ss:$16 sps:$4 sm:$0xff]   ;;  %v213_v44 = vmax.f32 %v205_v39, 0.0 }
 0x120   :  { %v217_v14 = vpack.c.bf16 %v213_v44, %v213_v44 }
 0x121   :  { %1055 = vmatpush1.bf16.msra.mxu0 %v1591_v45  ;;  %1137 = vmatpush1.bf16.msra.mxu1 %v1594_v46  ;;  %v1779_v45 = vmov 1966171168  }
 0x122   :  { %1056 = vmatprep.subr.bf16.mxu0 %v1599_v47  ;;  %1138 = vmatprep.subr.bf16.mxu1 %v1602_v48  ;;  %v1194_v46 = vunpack.c.l.s4 %v1779_v45  ;;  %v1192_v48 = vcombine.high %v1453_v25, %v1453_v25 }
 0x124   :  { %v1195_v47 = vunpack.c.0.s8 %v1194_v46 }
 0x125   :  { %1057 = vmatpush1.bf16.msra.mxu0 %v1597_v49  ;;  %1139 = vmatpush1.bf16.msra.mxu1 %v1600_v50 }
 0x126   :  { %1058 = vmatprep.subr.bf16.mxu0 %v1605_v51  ;;  %1140 = vmatprep.subr.bf16.mxu1 %v1608_v52  ;;  %v1198_v49 = vsub.s32 %v1195_v47, %v1863_v12 }
 0x128   :  { %v1206_v50 = vrot.slane %v1192_v48, %v1198_v49  ;;  %v1199_v51 = vrot.slane %v1453_v25, %v1198_v49 }
 0x129   :  { %1059 = vmatpush1.bf16.msra.mxu0 %v1603_v53  ;;  %1141 = vmatpush1.bf16.msra.mxu1 %v1606_v54  ;;  %v347_v53 = vld [vmem:[%s1919_s4] sm:$0xf] }
 0x12a   :  { %1060 = vmatprep.subr.bf16.mxu0 %v1611_v55  ;;  %1142 = vmatprep.subr.bf16.mxu1 %v1614_v56  ;;  %v1208_v52 = vcombine.high %v1206_v50, %v1206_v50  ;;  %v352_v54 = vrot.slane %v347_v53, %v78_v13  ;;  %v360_v55 = vrot.slane %v347_v53, %v86_v29 }
 0x12b   :  { %v356_v56 = vrot.slane %v347_v53, %v82_v15 }
 0x12d   :  { %1061 = vmatpush1.bf16.msra.mxu0 %v1609_v57  ;;  %1143 = vmatpush1.bf16.msra.mxu1 %v1612_v58  ;;  %v364_v57 = vrot.slane %v347_v53, %v90_v16 }
 0x12e   :  { %1062 = vmatprep.subr.bf16.mxu0 %v1617_v59  ;;  %1144 = vmatprep.subr.bf16.mxu1 %v1620_v60 }
 0x131   :  { %1063 = vmatpush1.bf16.msra.mxu0 %v1615_v61  ;;  %1145 = vmatpush1.bf16.msra.mxu1 %v1618_v62 }
 0x132   :  { %1064 = vmatprep.subr.bf16.mxu0 %v1623_v63  ;;  %1146 = vmatprep.subr.bf16.mxu1 %v1626_v0 }
 0x135   :  { %1065 = vmatpush1.bf16.msra.mxu0 %v1621_v1  ;;  %1147 = vmatpush1.bf16.msra.mxu1 %v1624_v2 }
 0x136   :  { %1066 = vmatprep.subr.bf16.mxu0 %v1629_v3  ;;  %1148 = vmatprep.subr.bf16.mxu1 %v1632_v4 }
 0x139   :  { %1067 = vmatpush1.bf16.msra.mxu0 %v1627_v5  ;;  %1149 = vmatpush1.bf16.msra.mxu1 %v1630_v6 }
 0x13a   :  { %1068 = vmatprep.subr.bf16.mxu0 %v1635_v7  ;;  %1150 = vmatprep.subr.bf16.mxu1 %v1638_v8 }
 0x13d   :  { %1069 = vmatpush1.bf16.msra.mxu0 %v1633_v9  ;;  %1151 = vmatpush1.bf16.msra.mxu1 %v1636_v10  ;;  %v1207_v10 = vcombine.high %v1199_v51, %v1199_v51 }
 0x13e   :  { %1070 = vmatprep.subr.bf16.mxu0 %v1641_v11  ;;  %1152 = vmatprep.subr.bf16.mxu1 %v1644_v17  ;;  %v1183_v11 = vstv %s1921_s6  ;;  %s1745_s6 = scalar_lea.vmem %s1308_s19, 16 }
 0x13f   :  { %p1746_p10 = scmp.ne.s32.totalorder %s1308_s19, %s1745_s6  ;;  %p1751_p12 = scmp.lt.s32.totalorder %s1749_s20, %s1745_s6 }
 0x141   :  { %1071 = vmatpush1.bf16.msra.mxu0 %v1639_v18  ;;  %1153 = vmatpush1.bf16.msra.mxu1 %v1642_v19  ;;  %p1752_p13 = por %p1751_p12, %p1750_p11 }
 0x142   :  { %1072 = vmatprep.subr.bf16.mxu0 %v1647_v20  ;;  %1154 = vmatprep.subr.bf16.mxu1 %v1650_v21 }
 0x143   :  { %p1753_p0 = pnand %p1752_p13, %p1746_p10 }
 0x145   :  { %1073 = vmatpush1.bf16.msra.mxu0 %v1645_v22  ;;  %1155 = vmatpush1.bf16.msra.mxu1 %v1648_v23 }
 0x146   :  { %1074 = vmatprep.subr.bf16.mxu0 %v1653_v24  ;;  %1156 = vmatprep.subr.bf16.mxu1 %v1656_v26 }
 0x149   :  { %1075 = vmatpush1.bf16.msra.mxu0 %v1651_v27  ;;  %1157 = vmatpush1.bf16.msra.mxu1 %v1654_v28 }
 0x14a   :  { %1076 = vmatprep.subr.bf16.mxu0 %v1659_v30  ;;  %1158 = vmatprep.subr.bf16.mxu1 %v1662_v31 }
 0x14d   :  { %1077 = vmatpush1.bf16.msra.mxu0 %v1657_v32  ;;  %1159 = vmatpush1.bf16.msra.mxu1 %v1660_v33 }
 0x14e   :  { %1078 = vmatprep.subr.bf16.mxu0 %v1665_v35  ;;  %1160 = vmatprep.subr.bf16.mxu1 %v1668_v36 }
 0x151   :  { %1079 = vmatpush1.bf16.msra.mxu0 %v1663_v37  ;;  %1161 = vmatpush1.bf16.msra.mxu1 %v1666_v38 }
 0x152   :  { %1080 = vmatprep.subr.bf16.mxu0 %v1671_v40  ;;  %1162 = vmatprep.subr.bf16.mxu1 %v1674_v41 }
 0x155   :  { %1081 = vmatpush1.bf16.msra.mxu0 %v1669_v42  ;;  %1163 = vmatpush1.bf16.msra.mxu1 %v1672_v43 }
 0x158   :  { %1083 = vmatmul.mubr.bf16.vlgmr.msra.gmra.mrb[4].mxu0 %v217_v14  ;;  %1165 = vmatmul.mubr.bf16.vlgmr.msra.gmra.mrb[4].mxu1 %v217_v14 }
 0x159   :  { %1245 = vmatprep.mubr.bf16.mxu1 %v1206_v50  ;;  %1285 = vmatprep.mubr.bf16.mxu0 %v1208_v52 }
 0x22b   :  { %v1084_v58 = vpop.f32.mrb[4].mxu0  ;;  %v1166_v59 = vpop.f32.mrb[4].mxu1 }
 0x22c   :  { %v1455_v60 = vadd.f32 %v1084_v58, %v352_v54  ;;  %v1457_v61 = vadd.f32 %v1166_v59, %v360_v55  ;;  %v1086_v62 = vpop.f32.mrb[5].mxu0  ;;  %v1168_v63 = vpop.f32.mrb[5].mxu1 }
 0x22d   :  { %v1456_v0 = vadd.f32 %v1086_v62, %v356_v56  ;;  %v1458_v1 = vadd.f32 %v1168_v63, %v364_v57  ;;  %v1088_v2 = vpop.f32.mrb[6].mxu0  ;;  %v1170_v3 = vpop.f32.mrb[6].mxu1 }
 0x22e   :  { %v1173_v4 = vmax.f32 %v1455_v60, 0.0  ;;  %v1175_v5 = vmax.f32 %v1457_v61, 0.0  ;;  %v1089_v13 = vpop.f32.mrb[7].mxu0  ;;  %v1171_v6 = vpop.f32.mrb[7].mxu1 }
 0x22f   :  { %v1174_v7 = vmax.f32 %v1456_v0, 0.0  ;;  %v1176_v8 = vmax.f32 %v1458_v1, 0.0 }
 0x230   :  { %v1178_v12 = vpack.c.bf16 %v1173_v4, %v1173_v4  ;;  %v1180_v16 = vpack.c.bf16 %v1175_v5, %v1175_v5 }
 0x231   :  { %v1179_v15 = vpack.c.bf16 %v1174_v7, %v1174_v7  ;;  %v1181_v9 = vpack.c.bf16 %v1176_v8, %v1176_v8 }
 0x233   :  { %1213 = vmatprep.subr.bf16.mxu1 %v1179_v15  ;;  %1253 = vmatprep.subr.bf16.mxu0 %v1181_v9 }
 0x234   :  { %1214 = vmatpush1.bf16.xpose.msra.mxu1 %v1178_v12  ;;  %1254 = vmatpush1.bf16.xpose.msra.mxu0 %v1180_v16 }
 0x23b   :  { %1246 = vmatmul.mubr.bf16.vlgmr.msra.gmra.mrb[8].mxu1 %v1199_v51  ;;  %1286 = vmatmul.mubr.bf16.vlgmr.msra.gmra.mrb[8].mxu0 %v1207_v10 }
 0x30e   :  { %v1247_v17 = vpop.f32.mrb[8].mxu1  ;;  %v1287_v18 = vpop.f32.mrb[8].mxu0 }
 0x30f   :  { %v1248_v19 = vadd.f32 %v1247_v17, %v1183_v11  ;;  %v1249_v20 = vpop.f32.mrb[9].mxu1  ;;  %v1289_v21 = vpop.f32.mrb[9].mxu0 }
 0x310   :  { %v1250_v22 = vpop.f32.mrb[10].mxu1  ;;  %v1290_v23 = vpop.f32.mrb[10].mxu0 }
 0x311   :  { %v1288_v24 = vadd.f32 %v1287_v18, %v1248_v19  ;;  %v1251_v26 = vpop.f32.mrb[11].mxu1  ;;  %v1291_v27 = vpop.f32.mrb[11].mxu0 }
 0x313   :  { %v1454_v28 = vmul.f32 -1.442695, %v1288_v24 }
 0x315   :  { %1675 = vpow2.f32 %v1454_v28 }
 0x31f   :  { %v1676_v29 = vpop.eup %1675 }
 0x320   :  { %v1296_v30 = vadd.f32 1.0, %v1676_v29 }
 0x322   :  { %1677 = vrcp.f32 %v1296_v30 }
 0x32c   :  { %v1678_v31 = vpop.eup %1677 }
 0x32d   :  { %1300 = vst.msk [vmem:[#allocation9] sm:$0x1] %vm1299_vm2, %v1678_v31 }
 0x32e   :  { %1756 = shalt.err (!%p1753_p0)
}
 0x32f   :  { %s1757_s23 = scalar_lea.hbm %s1922_s7, 16 }
 0x330   :  { %p1758_p1 = scmp.ne.s32.totalorder %s1922_s7, %s1757_s23  ;;  %p1761_p2 = scmp.lt.u32.totalorder %s1757_s23, %s1922_s7 }
 0x332   :  { %p1763_p3 = pnand %p1761_p2, %p1758_p1 }
 0x334   :  { %1766 = shalt.err (!%p1763_p3)
}
 0x335   :  { %1310 = dma.vmem_to_hbm [thread:$0]  %s1308_s19, 16, %s1922_s7, [#allocation5]  }
 0x336   :  { %1771 = dma.done.wait [#allocation5], 16  }
 0x337   :  { %1772 = vsyncadd [#allocation5], 4294967280 }
 0x338   :  { %1314 = vsyncpa [#allocation4], 1 }
 0x339   :  { %1315 = vsyncpa [#allocation7], 1 }
 0x33a   :  { %1316 = vsyncpa [#allocation5], 1 }

</bundles_post_ra>
